<compile_context>
chip_gen: v7x
topology: tpu7x:2x2x1
jax: 0.10.0
libtpu: 0.0.40
codegen_flags: <defaults>
</compile_context>

<pallas_src>
import math

import jax
import jax.numpy as jnp
from jax.experimental import pallas as pl
from jax.experimental.pallas import tpu as pltpu


def _round_up(x, m):
    return ((x + m - 1) // m) * m


def _make_generator_kernel(n1_tiles, compute_dtype):
    """One matmul + bias per (row-tile, feature-tile); sigmoid on o3 tiles only."""

    def kernel(x_ref, w_ref, b_ref, o_ref):
        j = pl.program_id(1)
        x = x_ref[...].astype(compute_dtype)                # in-kernel cast (bf16 path)
        z = jnp.dot(x, w_ref[...],
                    preferred_element_type=jnp.float32)     # (tm, tn), f32 accumulation
        z = z + b_ref[...]                                  # bias broadcast (1, tn)

        @pl.when(j < n1_tiles)                              # [o1 | o2] segment: linear
        def _():
            o_ref[...] = z.astype(o_ref.dtype)

        @pl.when(j >= n1_tiles)                             # [o3] segment: sigmoid (EUP)
        def _():
            o_ref[...] = jax.nn.sigmoid(z).astype(o_ref.dtype)

    return kernel


def generator_forward(x, params, *, tile_m=256, tile_n=512, use_bf16=True,
                      out_dtype=jnp.float32):
    """x: (batch, seq, d_model) float32.  Returns (o1, o2, o3)."""
    w1, b1, w2, b2, w3, b3 = params
    batch, seq, d_model = x.shape
    vocab = w1.shape[1]

    n1 = vocab + 2                       # linear segment width   (o1 | o2)
    n3 = vocab - 1                       # sigmoid segment width  (o3)

    # Output-feature tile: multiple of 128 lanes, no wider than what is needed.
    tn = min(_round_up(tile_n, 128), max(_round_up(n1, 128), _round_up(n3, 128)))
    n1_pad = _round_up(n1, tn)           # sigmoid segment starts tn-aligned
    n3_pad = _round_up(n3, tn)
    n_pad = n1_pad + n3_pad
    n1_tiles = n1_pad // tn
    grid_n = n_pad // tn

    M = batch * seq
    sub = 16 if use_bf16 else 8          # bf16 packs 16 sublanes per vreg
    tm = _round_up(min(M, tile_m), sub)
    grid_m = pl.cdiv(M, tm)

    compute_dtype = jnp.bfloat16 if use_bf16 else jnp.float32
    w_bytes = 2 if use_bf16 else 4
    o_bytes = jnp.dtype(out_dtype).itemsize

    # Fuse + zero-pad weights/biases once (padded lanes stay exactly zero).
    zpad1 = jnp.zeros((d_model, n1_pad - n1), w1.dtype)
    zpad3 = jnp.zeros((d_model, n3_pad - n3), w1.dtype)
    w_fused = jnp.concatenate([w1, w2, zpad1, w3, zpad3], axis=1).astype(compute_dtype)
    bpad1 = jnp.zeros((1, n1_pad - n1), b1.dtype)
    bpad3 = jnp.zeros((1, n3_pad - n3), b1.dtype)
    b_fused = jnp.concatenate([b1, b2, bpad1, b3, bpad3], axis=1).astype(jnp.float32)

    x2d = x.reshape(M, d_model)          # free view; no wrapper pad / cast of x

    # VMEM budget for this tile plan (double-buffered inputs/outputs + f32 temps).
    vmem_est = (2 * tm * d_model * 4              # x tiles (f32)
                + 2 * d_model * tn * w_bytes      # fused weight tiles
                + 2 * 8 * tn * 4                  # bias tiles (sublane-padded)
                + 2 * tm * tn * o_bytes           # output tiles
                + tm * d_model * w_bytes          # in-kernel cast copy of x
                + 3 * tm * tn * 4)                # f32 intermediates (z / sigmoid)
    vmem_limit = int(min(max(vmem_est * 3 // 2 + (2 << 20), 32 << 20), 96 << 20))

    cost = pl.CostEstimate(
        flops=2 * M * d_model * n_pad,
        transcendentals=M * n3_pad,
        bytes_accessed=(M * d_model * 4
                        + grid_m * d_model * n_pad * w_bytes
                        + M * n_pad * o_bytes),
    )

    kernel = _make_generator_kernel(n1_tiles, compute_dtype)

    out = pl.pallas_call(
        kernel,
        out_shape=jax.ShapeDtypeStruct((M, n_pad), out_dtype),
        grid=(grid_m, grid_n),
        in_specs=[
            pl.BlockSpec((tm, d_model), lambda i, j: (i, 0)),   # x row tile (resident over N)
            pl.BlockSpec((d_model, tn), lambda i, j: (0, j)),   # fused weight tile
            pl.BlockSpec((1, tn), lambda i, j: (0, j)),         # fused bias tile
        ],
        out_specs=pl.BlockSpec((tm, tn), lambda i, j: (i, j)),  # lane-dense output tile
        compiler_params=pltpu.CompilerParams(
            dimension_semantics=("parallel", "parallel"),       # shard over v7x's 2 TCs
            vmem_limit_bytes=vmem_limit,
        ),
        cost_estimate=cost,
    )(x2d, w_fused, b_fused)

    # TODO(synk): emitting o1/o3 as separate lane-padded kernel outputs would
    # also remove these wrapper slices (one extra HBM pass over the output).
    o1 = out[:, :vocab].reshape(batch, seq, vocab)
    o2 = out[:, vocab:n1].reshape(batch, seq, 2)
    o3 = out[:, n1_pad:n1_pad + n3].reshape(batch, seq, n3)
    return o1, o2, o3


def init_generator_params(key, d_model, vocab):
    """Deterministic init mimicking nn.Linear (uniform(-1/sqrt(in), 1/sqrt(in))).

    Weights are stored as (in_features, out_features) — the transpose of
    PyTorch's (out, in) — so the kernel can do x @ W directly.  Biases are
    stored as (1, out_features).
    """
    bound = 1.0 / math.sqrt(d_model)
    keys = jax.random.split(key, 6)
    w1 = jax.random.uniform(keys[0], (d_model, vocab), jnp.float32, -bound, bound)
    b1 = jax.random.uniform(keys[1], (1, vocab), jnp.float32, -bound, bound)
    w2 = jax.random.uniform(keys[2], (d_model, 2), jnp.float32, -bound, bound)
    b2 = jax.random.uniform(keys[3], (1, 2), jnp.float32, -bound, bound)
    w3 = jax.random.uniform(keys[4], (d_model, vocab - 1), jnp.float32, -bound, bound)
    b3 = jax.random.uniform(keys[5], (1, vocab - 1), jnp.float32, -bound, bound)
    return (w1, b1, w2, b2, w3, b3)


def _reference(x, params):
    w1, b1, w2, b2, w3, b3 = params
    r1 = x @ w1 + b1[0]
    r2 = x @ w2 + b2[0]
    r3 = jax.nn.sigmoid(x @ w3 + b3[0])
    return r1, r2, r3


if __name__ == "__main__":
    key = jax.random.PRNGKey(0)
    k_x, k_p, k_x2, k_p2 = jax.random.split(key, 4)

    # ---- small config (single M tile, two N tiles: one linear + one sigmoid) ----
    batch, seq, d_model, vocab = 2, 8, 32, 7
    x = jax.random.normal(k_x, (batch, seq, d_model), jnp.float32)
    params = init_generator_params(k_p, d_model, vocab)
    r1, r2, r3 = _reference(x, params)

    # default: bf16 operands, f32 accumulation
    o1, o2, o3 = generator_forward(x, params)
    jax.block_until_ready((o1, o2, o3))
    assert o1.shape == (batch, seq, vocab)
    assert o2.shape == (batch, seq, 2)
    assert o3.shape == (batch, seq, vocab - 1)
    assert jnp.allclose(o1, r1, atol=5e-2, rtol=5e-2)
    assert jnp.allclose(o2, r2, atol=5e-2, rtol=5e-2)
    assert jnp.allclose(o3, r3, atol=5e-2, rtol=5e-2)

    # f32 operand path, tight tolerance
    o1f, o2f, o3f = generator_forward(x, params, use_bf16=False)
    jax.block_until_ready((o1f, o2f, o3f))
    assert jnp.allclose(o1f, r1, atol=1e-5)
    assert jnp.allclose(o2f, r2, atol=1e-5)
    assert jnp.allclose(o3f, r3, atol=1e-5)

    # ---- multi-tile config: exercises M tiling (incl. a partial last tile),
    #      N tiling and the sigmoid tile boundary ----
    batch2, seq2, d2, vocab2 = 4, 160, 128, 200      # M=640 -> 3 row tiles at tm=256
    x2 = jax.random.normal(k_x2, (batch2, seq2, d2), jnp.float32)
    params2 = init_generator_params(k_p2, d2, vocab2)
    q1, q2, q3 = _reference(x2, params2)

    p1, p2, p3 = generator_forward(x2, params2, tile_m=256, tile_n=256)
    jax.block_until_ready((p1, p2, p3))
    assert p1.shape == (batch2, seq2, vocab2)
    assert p2.shape == (batch2, seq2, 2)
    assert p3.shape == (batch2, seq2, vocab2 - 1)
    assert jnp.allclose(p1, q1, atol=5e-2, rtol=5e-2)
    assert jnp.allclose(p2, q2, atol=5e-2, rtol=5e-2)
    assert jnp.allclose(p3, q3, atol=5e-2, rtol=5e-2)

    p1f, p2f, p3f = generator_forward(x2, params2, tile_m=256, tile_n=256,
                                      use_bf16=False)
    jax.block_until_ready((p1f, p2f, p3f))
    assert jnp.allclose(p1f, q1, atol=2e-4)
    assert jnp.allclose(p2f, q2, atol=2e-4)
    assert jnp.allclose(p3f, q3, atol=2e-4)

    print("KERNEL_OK")
</pallas_src>

<mosaic_0001>
module attributes {stable_mosaic.version = 11 : i64} {
  func.func @kernel(%arg0: i32, %arg1: i32, %arg2: memref<16x32xf32, #tpu.memory_space<vmem>>, %arg3: memref<32x128xbf16, #tpu.memory_space<vmem>>, %arg4: memref<1x128xf32, #tpu.memory_space<vmem>>, %arg5: memref<16x128xf32, #tpu.memory_space<vmem>>) attributes {dimension_semantics = [#tpu.dimension_semantics<parallel>, #tpu.dimension_semantics<parallel>], iteration_bounds = array<i64: 1, 2>, scalar_prefetch = 0 : i64, scratch_operands = 0 : i64, tpu.core_type = #tpu.core_type<tc>, window_params = [{transform_indices = @transform_0, window_bounds = array<i64: 16, 32>}, {transform_indices = @transform_1, window_bounds = array<i64: 32, 128>}, {transform_indices = @transform_2, window_bounds = array<i64: 1, 128>}, {transform_indices = @transform_3, window_bounds = array<i64: 16, 128>}]} {
    %c0 = arith.constant 0 : index
    %c0_0 = arith.constant 0 : index
    %0 = vector.load %arg2[%c0, %c0_0] : memref<16x32xf32, #tpu.memory_space<vmem>>, vector<16x32xf32>
    %1 = arith.truncf %0 : vector<16x32xf32> to vector<16x32xbf16>
    %c0_1 = arith.constant 0 : index
    %c0_2 = arith.constant 0 : index
    %2 = vector.load %arg3[%c0_1, %c0_2] : memref<32x128xbf16, #tpu.memory_space<vmem>>, vector<32x128xbf16>
    %cst = arith.constant dense<0.000000e+00> : vector<16x128xf32>
    %3 = tpu.matmul %1, %2, %cst {dimension_numbers = #tpu.dot_dimension_numbers<[1], [0], [0], [1], [0, 0, 1, 1], [], []>} : vector<16x32xbf16>, vector<32x128xbf16>, vector<16x128xf32> -> vector<16x128xf32>
    %c0_3 = arith.constant 0 : index
    %c0_4 = arith.constant 0 : index
    %4 = vector.load %arg4[%c0_3, %c0_4] : memref<1x128xf32, #tpu.memory_space<vmem>>, vector<1x128xf32>
    %5 = vector.broadcast %4 : vector<1x128xf32> to vector<16x128xf32>
    %6 = arith.addf %3, %5 : vector<16x128xf32>
    %c1_i32 = arith.constant 1 : i32
    %7 = arith.cmpi slt, %arg1, %c1_i32 : i32
    %8 = arith.extui %7 : i1 to i32
    %c0_i32 = arith.constant 0 : i32
    %9 = arith.cmpi ne, %8, %c0_i32 : i32
    scf.if %9 {
      %c0_7 = arith.constant 0 : index
      %c0_8 = arith.constant 0 : index
      %13 = vector.load %arg5[%c0_7, %c0_8] : memref<16x128xf32, #tpu.memory_space<vmem>>, vector<16x128xf32>
      tpu.vector_store %arg5[%c0_7, %c0_8], %6 {strides = array<i32>} : memref<16x128xf32, #tpu.memory_space<vmem>>, vector<16x128xf32>,
    } else {
    }
    %c1_i32_5 = arith.constant 1 : i32
    %10 = arith.cmpi sge, %arg1, %c1_i32_5 : i32
    %11 = arith.extui %10 : i1 to i32
    %c0_i32_6 = arith.constant 0 : i32
    %12 = arith.cmpi ne, %11, %c0_i32_6 : i32
    scf.if %12 {
      %13 = arith.negf %6 : vector<16x128xf32>
      %14 = math.exp %13 : vector<16x128xf32>
      %cst_7 = arith.constant 1.000000e+00 : f32
      %15 = vector.broadcast %cst_7 : f32 to vector<16x128xf32>
      %16 = arith.addf %15, %14 : vector<16x128xf32>
      %17 = arith.divf %15, %16 : vector<16x128xf32>
      %c0_8 = arith.constant 0 : index
      %c0_9 = arith.constant 0 : index
      %18 = vector.load %arg5[%c0_8, %c0_9] : memref<16x128xf32, #tpu.memory_space<vmem>>, vector<16x128xf32>
      tpu.vector_store %arg5[%c0_8, %c0_9], %17 {strides = array<i32>} : memref<16x128xf32, #tpu.memory_space<vmem>>, vector<16x128xf32>,
    } else {
    }
    return
  }
  func.func @transform_0(%arg0: i32, %arg1: i32) -> (i32, i32) {
    %c0_i32 = arith.constant 0 : i32
    %c0_i32_0 = arith.constant 0 : i32
    return %arg0, %c0_i32 : i32, i32
  }
  func.func @transform_1(%arg0: i32, %arg1: i32) -> (i32, i32) {
    %c0_i32 = arith.constant 0 : i32
    %c0_i32_0 = arith.constant 0 : i32
    return %c0_i32, %arg1 : i32, i32
  }
  func.func @transform_2(%arg0: i32, %arg1: i32) -> (i32, i32) {
    %c0_i32 = arith.constant 0 : i32
    %c0_i32_0 = arith.constant 0 : i32
    return %c0_i32, %arg1 : i32, i32
  }
  func.func @transform_3(%arg0: i32, %arg1: i32) -> (i32, i32) {
    %c0_i32 = arith.constant 0 : i32
    return %arg0, %arg1 : i32, i32
  }
}

</mosaic_0001>

<bundles_post_ra>
// kernel: tpu_custom_call.1
= control target key start
LH: loop header
LB: loop body
LE: loop exit
PB: predicated region body
PF: predicated region fallthrough
CT: control target
= control target key end

     0   :  { %8 = vsyncpa [#allocation3], 0  ;;  %s996_s0 = inlined_call_operand.hbm [shape: f32[16,32], index: 0, kind: input, shape index: {}]   ;;  %s997_s1 = inlined_call_operand.hbm [shape: bf16[32,256], index: 1, kind: input, shape index: {}]   ;;  %s998_s2 = inlined_call_operand.vmem [shape: f32[1,256], index: 2, kind: input, shape index: {}]   ;;  %s999_s3 = inlined_call_operand.hbm [shape: f32[16,256], index: 3, kind: output, shape index: {}]  }
   0x1   :  { %9 = vsyncpa [#allocation6], 0 }
   0x2   :  { %11 = vsyncpa [#allocation6 + $0x1], 0 }
   0x3   :  { %12 = vsyncpa [#allocation4], 0 }
   0x4   :  { %14 = vsyncpa [#allocation4 + $0x1], 0  ;;  %s763_s12 = smov 0   ;;  %s765_s13 = smov 0  }
   0x5   :  { %s767_s14 = smov 0   ;;  %s769_s15 = smov 0  }
   0x6   :  { %s771_s16 = smov 0   ;;  %s773_s17 = smov 0  }
   0x7 LB: > { %s459_s18 = sadd.s32 4294967295, %s729_s17   ;;  %s460_s19 = sadd.s32 4294967294, %s729_s17   ;;  %s729_s17 = sphi %s773_s17, %s20_s17   ;;  %s725_s16 = sphi %s771_s16, %s1025_s16   ;;  %s721_s15 = sphi %s769_s15, %s1024_s15   ;;  %s717_s14 = sphi %s767_s14, %s1023_s14   ;;  %s713_s13 = sphi %s765_s13, %s1022_s13   ;;  %s709_s12 = sphi %s763_s12, %s1021_s12  }
   0x8   : > { %p72_p0 = scmp.ne.s32.totalorder %s717_s14, %s713_s13  ;;  %p73_p1 = scmp.eq.s32.totalorder %s729_s17, 0 }
   0x9   : > { %p78_p2 = scmp.ne.s32.totalorder %s713_s13, %s709_s12  ;;  %p800_p3 = scmp.eq.s32.totalorder %s459_s18, 0 }
   0xa   : > { %p804_p4 = por %p73_p1, %p72_p0  ;;  %p130_p5 = scmp.eq.s32.totalorder %s459_s18, 1 }
   0xb   : > { %s1006_s20 = scalar_select %p800_p3, 1, 0 }
   0xc   : > { %p810_p6 = por %p800_p3, %p78_p2  ;;  %p136_p7 = scmp.eq.s32.totalorder %s460_s19, 1 }
   0xd   : > { %p814_p8 = por %p130_p5, %p72_p0  ;;  %p461_p9 = scmp.ge.s32.totalorder %s729_s17, 1 }
   0xe   : > { %s1008_s22 = scalar_select %p810_p6, 1, 0 }
   0xf   : > { %s1009_s23 = scalar_select %p814_p8, 1, 0 }
  0x10   : > { %p819_p10 = por %p136_p7, %p78_p2  ;;  %p143_p11 = scmp.lt.s32.totalorder %s729_s17, 3 }
  0x11   : > { %s731_s26 = smov [#allocation2]   ;;  %p514_p1 = scmp.lt.s32.totalorder %s729_s17, 2 }
  0x12   : > { %s1010_s24 = scalar_select %p819_p10, 1, 0 }
  0x13   : > { %p824_p12 = pnand %p461_p9, %p143_p11  ;;  %s158_s27 = sshll.u32 %s731_s26, 4  ;;  %s828_s27 = int_to_ptr.vmem [resolvable:$true] %s158_s27 }
  0x14   : > { %p842_p2 = pnand %p514_p1, %p804_p4  ;;  %s29_s30 = sadd.s32 1, %s725_s16 }
  0x15   : > { %s1011_s25 = scalar_select %p824_p12, 1, 0 }
  0x16   : > { %p501_p13 = pneg %p824_p12  ;;  %s585_s6 = scalar_lea.hbm %s996_s0, 256 }
  0x17   : > { %s1013_s29 = scalar_select %p842_p2, 1, 0 }
  0x18   : > { %p836_p5 = pnand %p501_p13, %p800_p3  ;;  %p586_p7 = scmp.ne.s32.totalorder %s996_s0, %s585_s6 }
  0x19   : > { %p592_p4 = scmp.lt.u32.totalorder %s585_s6, %s996_s0 }
  0x1a   : > { %p587_p9 = pneg %p836_p5 }
  0x1c   : > { %p588_p11 = pnand %p587_p9, %p586_p7 }
  0x1e   : > { %p589_p13 = pneg %p588_p11 }
  0x20   : > { %p594_p1 = pnand %p592_p4, %p589_p13 }
  0x22   : > { %597 = shalt.err (!%p594_p1)
}
  0x23   : > { %s598_s11 = scalar_lea.vmem %s828_s27, 256  ;;  %p606_p6 = scmp.lt.s32.totalorder %s828_s27, %s828_s27 }
  0x24   : > { %p599_p0 = scmp.ne.s32.totalorder %s828_s27, %s598_s11  ;;  %p607_p3 = scmp.lt.s32.totalorder %s598_s11, %s598_s11 }
  0x26   : > { %p601_p10 = pnand %p599_p0, %p587_p9  ;;  %p608_p12 = por %p607_p3, %p606_p6 }
  0x28   : > { %p602_p8 = pneg %p601_p10 }
  0x2a   : > { %p609_p2 = pnand %p608_p12, %p602_p8 }
  0x2c   : > { %612 = shalt.err (!%p609_p2)
}
  0x2d   : > { %s732_s18 = smov 128   ;;  %s733_s19 = smov 8  }
  0x2e   : > { %504 = dma.hbm_to_vmem [thread:$0]  (!%p836_p5), %s996_s0, 256, %s828_s27, [#allocation3], %s732_s18, %s732_s18, %s733_s19  }
  0x2f   : > { %p30_p10 = scmp.ge.s32.totalorder %s29_s30, 2  ;;  %s65_s4 = sadd.s32 1, %s717_s14 }
  0x30   : > { %s172_s5 = sand.u32 1, %s717_s14   ;;  %s465_s8 = sshll.u32 %s725_s16, 6 }
  0x31   : > { %s1027_s30 = smov (%p30_p10, %s29_s30), 0  ;;  %s464_s6 = sshll.u32 %s172_s5, 4 }
  0x32   : > { %s62_s7 = ssub.s32 %s725_s16, %s1027_s30  ;;  %s880_s10 = scalar_lea.hbm %s997_s1, %s465_s8 }
  0x33   : > { %p63_p3 = scmp.eq.s32.totalorder %s62_s7, 0  ;;  %s176_s27 = scalar_lea.vmem [#allocation5], %s464_s6 }
  0x34   : > { %s182_s11 = sshll.u32 %s176_s27, 4  ;;  %s887_s21 = scalar_lea.sflag [#allocation6], %s172_s5  ;;  %s885_s11 = int_to_ptr.vmem [resolvable:$true] %s182_s11 }
  0x35   : > { %s883_s19 = scalar_select %p63_p3, %s717_s14, %s65_s4  }
  0x36   : > { %s613_s26 = scalar_lea.hbm %s880_s10, 256  ;;  %p1014_p8 = scmp.ne.s32.totalorder %s1013_s29, 0 }
  0x37   : > { %p614_p6 = scmp.ne.s32.totalorder %s880_s10, %s613_s26  ;;  %s618_s9 = scalar_lea.hbm %s997_s1, 512 }
  0x38   : > { %p615_p12 = pneg %p1014_p8  ;;  %p619_p2 = scmp.lt.u32.totalorder %s880_s10, %s997_s1 }
  0x39   : > { %p620_p7 = scmp.lt.u32.totalorder %s618_s9, %s613_s26  ;;  %p622_p11 = scmp.lt.u32.totalorder %s613_s26, %s880_s10 }
  0x3a   : > { %p616_p0 = pnand %p615_p12, %p614_p6 }
  0x3b   : > { %p621_p9 = por %p620_p7, %p619_p2 }
  0x3c   : > { %p617_p5 = pneg %p616_p0 }
  0x3d   : > { %p623_p13 = por %p622_p11, %p621_p9 }
  0x3f   : > { %p624_p4 = pnand %p623_p13, %p617_p5 }
  0x41   : > { %627 = shalt.err (!%p624_p4)
}
  0x42   : > { %s628_s4 = scalar_lea.vmem %s885_s11, 256  ;;  %s734_s5 = smov [#allocation5]  }
  0x43   : > { %p629_p1 = scmp.ne.s32.totalorder %s885_s11, %s628_s4  ;;  %s633_s27 = sshll.u32 %s734_s5, 4  ;;  %s634_s27 = int_to_ptr.vmem [resolvable:$false] %s633_s27 }
  0x44   : > { %s635_s7 = scalar_lea.vmem %s634_s27, 512  ;;  %p636_p6 = scmp.lt.s32.totalorder %s885_s11, %s634_s27 }
  0x45   : > { %p631_p10 = pnand %p629_p1, %p615_p12  ;;  %p637_p0 = scmp.lt.s32.totalorder %s635_s7, %s628_s4 }
  0x47   : > { %p632_p3 = pneg %p631_p10  ;;  %p638_p2 = por %p637_p0, %p636_p6 }
  0x49   : > { %p639_p7 = pnand %p638_p2, %p632_p3 }
  0x4b   : > { %642 = shalt.err (!%p639_p7)
}
  0x4c   : > { %s735_s26 = smov 64   ;;  %s736_s8 = smov 4  }
  0x4d   : > { %508 = dma.hbm_to_vmem [thread:$0]  (!%p1014_p8), %s880_s10, 256, %s885_s11, %s887_s21, %s732_s18, %s735_s26, %s736_s8  }
  0x4e   : > { %p1015_p12 = scmp.ne.s32.totalorder %s1011_s25, 0 }
  0x4f   : > { %p1016_p5 = scmp.ne.s32.totalorder (!%p1015_p12), %s1006_s20, 0 }
  0x50   : > { %200 = sbr.rel (%p1015_p12) target bundleno = 373 (0x175), region = 32 }
  0x57   : > { %696 = dma.done.wait (%p1016_p5), [#allocation3], 256  }
  0x58   : > { %698 = vsyncadd (%p1016_p5), [#allocation3], 4294967040  ;;  %s923_s9 = sand.u32 1, %s713_s13   ;;  %p1017_p9 = scmp.ne.s32.totalorder %s1008_s22, 0 }
  0x59   : > { %s468_s6 = sshll.u32 %s923_s9, 4  ;;  %s207_s28 = scalar_lea.sflag [#allocation6], %s923_s9 }
  0x5a   : > { %s210_s29 = scalar_lea.vmem [#allocation5], %s468_s6 }
  0x5b   : > { %700 = dma.done.wait (%p1017_p9), %s207_s28, 256  }
  0x5c   : > { %702 = vsyncadd (%p1017_p9), %s207_s28, 4294967040  ;;  %v737_v0 = vmov 0.0   ;;  %vm738_vm0 = vmmov 0   ;;  %v575_v1 = vld [vmem:[%s210_s29] sm:$0xff]   ;;  %v576_v2 = vld [vmem:[%s210_s29 + $0x8] sm:$0xff]   ;;  %vm268_vm1 = vcmask 261120  }
  0x5d   : > { %485 = vmatprep.subr.bf16.mxu0 %v737_v0  ;;  %489 = vmatprep.mubr.msk.bf16.mxu0 %vm738_vm0, %v737_v0  ;;  %v242_v3 = vld [vmem:[#allocation2] sm:$0xff]  ;;  %v243_v4 = vld [vmem:[#allocation2 + $0x8] sm:$0xff]  ;;  %p237_p8 = scmp.lt.s32.totalorder %s721_s15, 1  ;;  %s235_s10 = scalar_lea.vmem [#allocation7], %s468_s6 }
  0x5e   : > { %486 = vmatpush3.bf16.msra.mxu0 %v575_v1  ;;  %v244_v5 = vpack.c.bf16 %v243_v4, %v242_v3  ;;  %p474_p11 = scmp.ge.s32.totalorder %s721_s15, 1 }
  0x5f   : > { %487 = vmatprep.subr.bf16.mxu0 %v737_v0  ;;  %s238_s20 = scalar_select %p237_p8, %s721_s15, 1 }
  0x61   : > { %s239_s18 = scalar_lea.vmem %s998_s2, %s238_s20 }
  0x62   : > { %488 = vmatpush3.bf16.msra.mxu0 %v576_v2  ;;  %v470_v6 = vld [vmem:[%s239_s18] ss:$0 sm:$0xff] }
  0x65   : > { %490 = vmatmul.mubr.msk.bf16.vlgmr.msra.gmra.mrb[0].mxu0 %vm268_vm1, %v244_v5 }
 0x135   : > { %316 = sbr.rel (%p474_p11) target bundleno = 318 (0x13e), region = 44 }
 0x138   : > { %v306_v7 = vpop.f32.mrb[0].mxu0 }
 0x139   : > { %v307_v8 = vadd.f32 %v470_v6, %v306_v7  ;;  %v491_v9 = vpop.f32.mrb[1].mxu0 }
 0x13a   : > { %v309_v10 = vpop.f32.mrb[2].mxu0 }
 0x13b   : > { %v310_v11 = vadd.f32 %v470_v6, %v309_v10  ;;  %v492_v12 = vpop.f32.mrb[3].mxu0  ;;  %317 = vst [vmem:[%s235_s10] sm:$0xff] (!%p474_p11), %v307_v8 }
 0x13d   : > { %318 = vst [vmem:[%s235_s10 + $0x8] sm:$0xff] %v310_v11 }
 0x13e PF: > { %322 = sbr.rel (%p237_p8) target bundleno = 346 (0x15a), region = 48  ;;  %v476_v13 = vmul.f32 (!%p237_p8), -1.442695, %v307_v8  ;;  %v477_v14 = vmul.f32 (!%p237_p8), -1.442695, %v310_v11 }
 0x140   : > { %577 = vpow2.f32 (!%p237_p8), %v476_v13 }
 0x141   : > { %579 = vpow2.f32 (!%p237_p8), %v477_v14 }
 0x14a   : > { %v578_v15 = vpop.eup %577 }
 0x14b   : > { %v580_v16 = vpop.eup %579  ;;  %v329_v17 = vadd.f32 1.0, %v578_v15 }
 0x14c   : > { %v330_v18 = vadd.f32 1.0, %v580_v16 }
 0x14d   : > { %581 = vrcp.f32 %v329_v17 }
 0x14e   : > { %583 = vrcp.f32 %v330_v18 }
 0x157   : > { %v582_v19 = vpop.eup %581 }
 0x158   : > { %v584_v20 = vpop.eup %583  ;;  %335 = vst [vmem:[%s235_s10] sm:$0xff] %v582_v19 }
 0x159   : > { %336 = vst [vmem:[%s235_s10 + $0x8] sm:$0xff] %v584_v20 }
 0x15a PF: > { %s479_s11 = sshll.u32 %s721_s15, 7  ;;  %s353_s27 = sshll.u32 %s235_s10, 4  ;;  %s947_s27 = int_to_ptr.vmem [resolvable:$true] %s353_s27 }
 0x15b   : > { %s945_s5 = scalar_lea.hbm %s999_s3, %s479_s11  ;;  %s338_s7 = scalar_lea.sflag [#allocation4], %s923_s9 }
 0x15c   : > { %s643_s26 = scalar_lea.vmem %s947_s27, 256  ;;  %p1018_p4 = scmp.ne.s32.totalorder %s1009_s23, 0 }
 0x15d   : > { %p644_p13 = scmp.ne.s32.totalorder %s947_s27, %s643_s26  ;;  %s739_s8 = smov [#allocation7]  }
 0x15e   : > { %s647_s6 = sshll.u32 %s739_s8, 4  ;;  %s648_s6 = int_to_ptr.vmem [resolvable:$false] %s647_s6 }
 0x15f   : > { %p645_p1 = pnand %p644_p13, %p1018_p4  ;;  %s649_s15 = scalar_lea.vmem %s648_s6, 512 }
 0x160   : > { %p650_p3 = scmp.lt.s32.totalorder %s947_s27, %s648_s6  ;;  %p651_p6 = scmp.lt.s32.totalorder %s649_s15, %s643_s26 }
 0x161   : > { %p646_p10 = pneg %p645_p1 }
 0x162   : > { %p652_p0 = por %p651_p6, %p650_p3 }
 0x164   : > { %p653_p2 = pnand %p652_p0, %p646_p10 }
 0x166   : > { %656 = shalt.err (!%p653_p2)
}
 0x167   : > { %s657_s28 = scalar_lea.hbm %s945_s5, 256  ;;  %s661_s22 = scalar_lea.hbm %s999_s3, 512 }
 0x168   : > { %p658_p7 = scmp.ne.s32.totalorder %s945_s5, %s657_s28  ;;  %p662_p9 = scmp.lt.u32.totalorder %s945_s5, %s999_s3 }
 0x169   : > { %p663_p8 = scmp.lt.u32.totalorder %s661_s22, %s657_s28  ;;  %p665_p13 = scmp.lt.u32.totalorder %s657_s28, %s945_s5 }
 0x16a   : > { %p659_p12 = pnand %p658_p7, %p1018_p4 }
 0x16b   : > { %p664_p11 = por %p663_p8, %p662_p9 }
 0x16c   : > { %p660_p5 = pneg %p659_p12 }
 0x16d   : > { %p666_p1 = por %p665_p13, %p664_p11 }
 0x16f   : > { %p667_p10 = pnand %p666_p1, %p660_p5 }
 0x171   : > { %670 = shalt.err (!%p667_p10)
}
 0x172   : > { %s740_s10 = smov 128   ;;  %s741_s11 = smov 256  }
 0x173   : > { %s742_s21 = smov 8  }
 0x174   : > { %499 = dma.vmem_to_hbm [thread:$0]  (%p1018_p4), %s947_s27, 256, %s945_s5, %s338_s7, %s740_s10, %s741_s11, %s742_s21  }
 0x175 PF: > { %s368_s4 = sand.u32 1, %s709_s12   ;;  %p1019_p3 = scmp.ne.s32.totalorder %s1010_s24, 0 }
 0x176   : > { %p1020_p6 = scmp.ge.s32.totalorder %s729_s17, 2  ;;  %s369_s26 = scalar_lea.sflag [#allocation4], %s368_s4 }
 0x178   : > { %p510_p0 = pnand %p1020_p6, %p1019_p3 }
 0x17a   : > { %704 = dma.done.wait (!%p510_p0), %s369_s26, 256  }
 0x17b   : > { %706 = vsyncadd (!%p510_p0), %s369_s26, 4294967040  ;;  %s20_s17 = sadd.s32 1, %s729_s17   ;;  %s1021_s12 = smov %s713_s13 }
 0x17c   : > { %p17_p2 = scmp.ge.s32.totalorder %s20_s17, 4   ;;  %s1022_s13 = smov %s717_s14 }
 0x17d   : > { %s1023_s14 = smov %s883_s19  ;;  %s1024_s15 = smov %s725_s16 }
 0x17e   : > { %s1025_s16 = smov %s1027_s30  ;;  %19 = sbr.rel (!%p17_p2) target bundleno = 7 (0x7), region = 94 }
 0x185   :  { %374 = vsyncpa [#allocation3], 1 }
 0x186   :  { %376 = vsyncpa [#allocation3 + $0x1], 1 }
 0x187   :  { %377 = vsyncpa [#allocation6], 1 }
 0x188   :  { %379 = vsyncpa [#allocation6 + $0x1], 1 }
 0x189   :  { %380 = vsyncpa [#allocation4], 1 }
 0x18a   :  { %382 = vsyncpa [#allocation4 + $0x1], 1 }

</bundles_post_ra>
